<compile_context>
chip_gen: v5e
topology: v5e:2x2
jax: 0.10.0
libtpu: 0.0.40
codegen_flags: <defaults>
</compile_context>

<pallas_src>
import jax
import jax.numpy as jnp
from jax.experimental import pallas as pl
from jax.experimental.pallas import tpu as pltpu


# ---------------------------------------------------------------------------
# Fused kernel: synthetic inner model (both CFG branches, folded) + combine.
#
#   sigma    : (B,)       SMEM
#   scale    : (1,)       SMEM
#   x        : (B*C, HW)  VMEM   (pure reshape of NCHW; lane dim = HW)
#   w_ch_t   : (C, C)     VMEM   (W_ch transposed: w_ch_t[c_out, c_in])
#   w_cond_t : (C, D)     VMEM   (W_cond transposed)
#   uncond   : (B, T, D)  VMEM
#   cond     : (B, T, D)  VMEM
#   out      : (B*C, HW)  VMEM   (single dense, lane/sublane-aligned store)
# ---------------------------------------------------------------------------
def _make_cfg_denoiser_kernel(batch, channels):
    def kernel(sigma_ref, scale_ref, x_ref, w_ch_t_ref, w_cond_t_ref,
               uncond_ref, cond_ref, out_ref):
        scale = scale_ref[0]
        w_ch_t = w_ch_t_ref[...]        # (C, C)
        w_cond_t = w_cond_t_ref[...]    # (C, D)
        xf = x_ref[...]                 # (B*C, HW) single dense load

        pieces = []
        for b in range(batch):          # tiny static unroll
            # --- conditioning: CFG mix folded onto the tiny pooled vectors ---
            pooled_u = jnp.mean(uncond_ref[b], axis=0, keepdims=True)   # (1, D)
            pooled_c = jnp.mean(cond_ref[b], axis=0, keepdims=True)     # (1, D)
            pooled_mix = pooled_u + (pooled_c - pooled_u) * scale       # (1, D)
            # W_cond^T @ pooled_mix via VPU multiply + lane reduce (no MXU).
            cproj_mix = jnp.sum(w_cond_t * pooled_mix, axis=1,
                                keepdims=True)                           # (C, 1)

            # --- sigma modulation folded into the tiny weight columns ---
            inv = 1.0 / (sigma_ref[b] + 1.0)   # exact scalar reciprocal, once per item
            w_scaled = w_ch_t * inv            # (C, C) tiny
            bias_col = cproj_mix * inv         # (C, 1) tiny

            # --- channel mix: C outer-product MACs on the (C, HW) slice ---
            xb = xf[b * channels:(b + 1) * channels, :]                  # (C, HW)
            acc = bias_col + w_scaled[:, 0:1] * xb[0:1, :]
            for c_in in range(1, channels):
                acc = acc + w_scaled[:, c_in:c_in + 1] * xb[c_in:c_in + 1, :]
            pieces.append(acc)                                           # (C, HW)

        # Single dense store: sublane dim B*C = 8 (full f32 vregs), lane dim
        # HW = 256 (multiple of 128) -> unmasked vst.
        out_ref[...] = jnp.concatenate(pieces, axis=0).astype(out_ref.dtype)

    return kernel


def _fused_cfg_denoiser(x_flat, sigma, scale, uncond, cond, w_ch_t, w_cond_t,
                        batch, channels):
    BC, HW = x_flat.shape
    C = channels
    T, D = uncond.shape[1], uncond.shape[2]
    kernel = _make_cfg_denoiser_kernel(batch, channels)
    return pl.pallas_call(
        kernel,
        out_shape=jax.ShapeDtypeStruct((BC, HW), jnp.float32),
        grid=(1,),  # whole problem is a few tens of KB: one VMEM-resident step
        in_specs=[
            pl.BlockSpec(memory_space=pltpu.MemorySpace.SMEM),    # sigma (B,)
            pl.BlockSpec(memory_space=pltpu.MemorySpace.SMEM),    # cond_scale (1,)
            pl.BlockSpec((BC, HW), lambda i: (0, 0)),             # x packed (B*C, HW)
            pl.BlockSpec((C, C), lambda i: (0, 0)),               # W_ch^T
            pl.BlockSpec((C, D), lambda i: (0, 0)),               # W_cond^T
            pl.BlockSpec((batch, T, D), lambda i: (0, 0, 0)),     # uncond tokens
            pl.BlockSpec((batch, T, D), lambda i: (0, 0, 0)),     # cond tokens
        ],
        out_specs=pl.BlockSpec((BC, HW), lambda i: (0, 0)),
        compiler_params=pltpu.CompilerParams(
            dimension_semantics=("arbitrary",)),
    )(sigma, scale, x_flat, w_ch_t, w_cond_t, uncond, cond)


# ---------------------------------------------------------------------------
# One-time parameter preparation (hoisted out of the per-step forward).
# ---------------------------------------------------------------------------
def prepare_inner_model_params(w_ch, w_cond):
    """Call once; CFGDenoiser.forward runs every sampler step."""
    return {"w_ch_t": jnp.asarray(w_ch, jnp.float32).T,     # (C, C)
            "w_cond_t": jnp.asarray(w_cond, jnp.float32).T}  # (C, D)


# ---------------------------------------------------------------------------
# CFGDenoiser.forward
# ---------------------------------------------------------------------------
def cfg_denoiser_forward(x, sigma, uncond, cond, cond_scale, params):
    """x: NCHW (B, C, H, W); sigma: (B,); uncond/cond: (B, T, D) token embeds."""
    B, C, H, W = x.shape
    # Original module dispatch (static shapes): batched inner-model call when
    # token lengths match and B*H*W < 96*96, else two separate inner calls.
    # For this per-batch-item linear synthetic inner model both paths are
    # mathematically identical, so a single fused kernel — which also shares
    # x@W_ch between the branches and folds the CFG mix onto the tiny pooled
    # conditioning vectors — serves both.
    # TODO(synk): a general (nonlinear / cross-batch) inner model would need
    # the original batched-vs-split inner-model dispatch restored.
    x_flat = x.reshape(B * C, H * W)   # pure reshape; channels packed into sublanes
    scale = jnp.asarray(cond_scale, jnp.float32).reshape(1)
    out_flat = _fused_cfg_denoiser(x_flat, sigma, scale, uncond, cond,
                                   params["w_ch_t"], params["w_cond_t"], B, C)
    return out_flat.reshape(B, C, H, W)


# Pure-JAX reference (same math, original channels-last formulation,
# explicit two-branch CFG like the PyTorch module).
def _reference_forward(x, sigma, uncond, cond, cond_scale, w_ch, w_cond):
    B, C, H, W = x.shape
    x_flat = jnp.transpose(x, (0, 2, 3, 1)).reshape(B, H * W, C)

    def inner(xf, sg, toks):
        pooled = toks.mean(axis=1)                    # (N, D)
        cproj = pooled @ w_cond                       # (N, C)
        y = xf @ w_ch + cproj[:, None, :]
        return y / (sg[:, None, None] + 1.0)

    eps_u = inner(x_flat, sigma, uncond)
    eps_c = inner(x_flat, sigma, cond)
    out = eps_u + (eps_c - eps_u) * cond_scale
    return out.reshape(B, H, W, C).transpose(0, 3, 1, 2)


if __name__ == "__main__":
    key = jax.random.PRNGKey(0)
    kx, ks, ku, kc, kw1, kw2 = jax.random.split(key, 6)

    B, C, H, W = 2, 4, 16, 16      # latent-like NCHW input
    T, D = 8, 32                   # conditioning tokens

    x = jax.random.normal(kx, (B, C, H, W), dtype=jnp.float32)
    sigma = jnp.abs(jax.random.normal(ks, (B,), dtype=jnp.float32)) + 0.5
    uncond = jax.random.normal(ku, (B, T, D), dtype=jnp.float32)
    cond = jax.random.normal(kc, (B, T, D), dtype=jnp.float32)
    cond_scale = jnp.float32(7.5)

    # Deterministic synthetic inner-model parameters.
    w_ch = jax.random.normal(kw1, (C, C), dtype=jnp.float32) * 0.1
    w_cond = jax.random.normal(kw2, (D, C), dtype=jnp.float32) * 0.1

    params = prepare_inner_model_params(w_ch, w_cond)   # one-time transform

    out = cfg_denoiser_forward(x, sigma, uncond, cond, cond_scale, params)
    out = jax.block_until_ready(out)

    ref = _reference_forward(x, sigma, uncond, cond, cond_scale, w_ch, w_cond)
    assert out.shape == (B, C, H, W)
    assert jnp.allclose(out, ref, atol=1e-4, rtol=1e-4), "mismatch vs reference"

    print("KERNEL_OK")
</pallas_src>

<mosaic_0001>
module attributes {stable_mosaic.version = 11 : i64} {
  func.func @kernel(%arg0: i32, %arg1: memref<2xf32, #tpu.memory_space<smem>>, %arg2: memref<1xf32, #tpu.memory_space<smem>>, %arg3: memref<8x256xf32, #tpu.memory_space<vmem>>, %arg4: memref<4x4xf32, #tpu.memory_space<vmem>>, %arg5: memref<4x32xf32, #tpu.memory_space<vmem>>, %arg6: memref<2x8x32xf32, #tpu.memory_space<vmem>>, %arg7: memref<2x8x32xf32, #tpu.memory_space<vmem>>, %arg8: memref<8x256xf32, #tpu.memory_space<vmem>>) attributes {dimension_semantics = [#tpu.dimension_semantics<arbitrary>], iteration_bounds = array<i64: 1>, scalar_prefetch = 0 : i64, scratch_operands = 0 : i64, tpu.core_type = #tpu.core_type<tc>, window_params = [{transform_indices = @transform_0, window_bounds = array<i64: 2>}, {transform_indices = @transform_1, window_bounds = array<i64: 1>}, {pipeline_mode = #tpu.pipeline_mode<synchronous>, transform_indices = @transform_2, window_bounds = array<i64: 8, 256>}, {pipeline_mode = #tpu.pipeline_mode<synchronous>, transform_indices = @transform_3, window_bounds = array<i64: 4, 4>}, {pipeline_mode = #tpu.pipeline_mode<synchronous>, transform_indices = @transform_4, window_bounds = array<i64: 4, 32>}, {pipeline_mode = #tpu.pipeline_mode<synchronous>, transform_indices = @transform_5, window_bounds = array<i64: 2, 8, 32>}, {pipeline_mode = #tpu.pipeline_mode<synchronous>, transform_indices = @transform_6, window_bounds = array<i64: 2, 8, 32>}, {pipeline_mode = #tpu.pipeline_mode<synchronous>, transform_indices = @transform_7, window_bounds = array<i64: 8, 256>}]} {
    %c0 = arith.constant 0 : index
    %0 = memref.load %arg2[%c0] : memref<1xf32, #tpu.memory_space<smem>>
    %c0_0 = arith.constant 0 : index
    %c0_1 = arith.constant 0 : index
    %1 = vector.load %arg4[%c0_0, %c0_1] : memref<4x4xf32, #tpu.memory_space<vmem>>, vector<4x4xf32>
    %c0_2 = arith.constant 0 : index
    %c0_3 = arith.constant 0 : index
    %2 = vector.load %arg5[%c0_2, %c0_3] : memref<4x32xf32, #tpu.memory_space<vmem>>, vector<4x32xf32>
    %c0_4 = arith.constant 0 : index
    %c0_5 = arith.constant 0 : index
    %3 = vector.load %arg3[%c0_4, %c0_5] : memref<8x256xf32, #tpu.memory_space<vmem>>, vector<8x256xf32>
    %c0_6 = arith.constant 0 : index
    %c0_7 = arith.constant 0 : index
    %c0_8 = arith.constant 0 : index
    %4 = vector.load %arg6[%c0_6, %c0_7, %c0_8] : memref<2x8x32xf32, #tpu.memory_space<vmem>>, vector<1x8x32xf32>
    %5 = vector.shape_cast %4 : vector<1x8x32xf32> to vector<8x32xf32>
    %cst = arith.constant dense<0.000000e+00> : vector<32xf32>
    %6 = vector.multi_reduction <add>, %5, %cst [0] : vector<8x32xf32> to vector<32xf32>
    %7 = vector.shape_cast %6 : vector<32xf32> to vector<1x32xf32>
    %cst_9 = arith.constant 8.000000e+00 : f32
    %8 = vector.broadcast %cst_9 : f32 to vector<1x32xf32>
    %9 = arith.divf %7, %8 : vector<1x32xf32>
    %c0_10 = arith.constant 0 : index
    %c0_11 = arith.constant 0 : index
    %c0_12 = arith.constant 0 : index
    %10 = vector.load %arg7[%c0_10, %c0_11, %c0_12] : memref<2x8x32xf32, #tpu.memory_space<vmem>>, vector<1x8x32xf32>
    %11 = vector.shape_cast %10 : vector<1x8x32xf32> to vector<8x32xf32>
    %cst_13 = arith.constant dense<0.000000e+00> : vector<32xf32>
    %12 = vector.multi_reduction <add>, %11, %cst_13 [0] : vector<8x32xf32> to vector<32xf32>
    %13 = vector.shape_cast %12 : vector<32xf32> to vector<1x32xf32>
    %cst_14 = arith.constant 8.000000e+00 : f32
    %14 = vector.broadcast %cst_14 : f32 to vector<1x32xf32>
    %15 = arith.divf %13, %14 : vector<1x32xf32>
    %16 = arith.subf %15, %9 : vector<1x32xf32>
    %17 = vector.broadcast %0 : f32 to vector<1x32xf32>
    %18 = arith.mulf %16, %17 : vector<1x32xf32>
    %19 = arith.addf %9, %18 : vector<1x32xf32>
    %20 = vector.broadcast %19 : vector<1x32xf32> to vector<4x32xf32>
    %21 = arith.mulf %2, %20 : vector<4x32xf32>
    %cst_15 = arith.constant dense<0.000000e+00> : vector<4xf32>
    %22 = vector.multi_reduction <add>, %21, %cst_15 [1] : vector<4x32xf32> to vector<4xf32>
    %23 = vector.shape_cast %22 : vector<4xf32> to vector<4x1xf32>
    %c0_16 = arith.constant 0 : index
    %24 = memref.load %arg1[%c0_16] : memref<2xf32, #tpu.memory_space<smem>>
    %cst_17 = arith.constant 1.000000e+00 : f32
    %25 = arith.addf %24, %cst_17 : f32
    %cst_18 = arith.constant 1.000000e+00 : f32
    %26 = arith.divf %cst_18, %25 : f32
    %27 = vector.broadcast %26 : f32 to vector<4x4xf32>
    %28 = arith.mulf %1, %27 : vector<4x4xf32>
    %29 = vector.broadcast %26 : f32 to vector<4x1xf32>
    %30 = arith.mulf %23, %29 : vector<4x1xf32>
    %31 = vector.extract_strided_slice %3 {offsets = [0, 0], sizes = [4, 256], strides = [1, 1]} : vector<8x256xf32> to vector<4x256xf32>
    %32 = vector.extract_strided_slice %28 {offsets = [0, 0], sizes = [4, 1], strides = [1, 1]} : vector<4x4xf32> to vector<4x1xf32>
    %33 = vector.extract_strided_slice %31 {offsets = [0, 0], sizes = [1, 256], strides = [1, 1]} : vector<4x256xf32> to vector<1x256xf32>
    %34 = vector.broadcast %32 : vector<4x1xf32> to vector<4x256xf32>
    %35 = vector.broadcast %33 : vector<1x256xf32> to vector<4x256xf32>
    %36 = arith.mulf %34, %35 : vector<4x256xf32>
    %37 = vector.broadcast %30 : vector<4x1xf32> to vector<4x256xf32>
    %38 = arith.addf %37, %36 : vector<4x256xf32>
    %39 = vector.extract_strided_slice %28 {offsets = [0, 1], sizes = [4, 1], strides = [1, 1]} : vector<4x4xf32> to vector<4x1xf32>
    %40 = vector.extract_strided_slice %31 {offsets = [1, 0], sizes = [1, 256], strides = [1, 1]} : vector<4x256xf32> to vector<1x256xf32>
    %41 = vector.broadcast %39 : vector<4x1xf32> to vector<4x256xf32>
    %42 = vector.broadcast %40 : vector<1x256xf32> to vector<4x256xf32>
    %43 = arith.mulf %41, %42 : vector<4x256xf32>
    %44 = arith.addf %38, %43 : vector<4x256xf32>
    %45 = vector.extract_strided_slice %28 {offsets = [0, 2], sizes = [4, 1], strides = [1, 1]} : vector<4x4xf32> to vector<4x1xf32>
    %46 = vector.extract_strided_slice %31 {offsets = [2, 0], sizes = [1, 256], strides = [1, 1]} : vector<4x256xf32> to vector<1x256xf32>
    %47 = vector.broadcast %45 : vector<4x1xf32> to vector<4x256xf32>
    %48 = vector.broadcast %46 : vector<1x256xf32> to vector<4x256xf32>
    %49 = arith.mulf %47, %48 : vector<4x256xf32>
    %50 = arith.addf %44, %49 : vector<4x256xf32>
    %51 = vector.extract_strided_slice %28 {offsets = [0, 3], sizes = [4, 1], strides = [1, 1]} : vector<4x4xf32> to vector<4x1xf32>
    %52 = vector.extract_strided_slice %31 {offsets = [3, 0], sizes = [1, 256], strides = [1, 1]} : vector<4x256xf32> to vector<1x256xf32>
    %53 = vector.broadcast %51 : vector<4x1xf32> to vector<4x256xf32>
    %54 = vector.broadcast %52 : vector<1x256xf32> to vector<4x256xf32>
    %55 = arith.mulf %53, %54 : vector<4x256xf32>
    %56 = arith.addf %50, %55 : vector<4x256xf32>
    %c1 = arith.constant 1 : index
    %c0_19 = arith.constant 0 : index
    %c0_20 = arith.constant 0 : index
    %57 = vector.load %arg6[%c1, %c0_19, %c0_20] : memref<2x8x32xf32, #tpu.memory_space<vmem>>, vector<1x8x32xf32>
    %58 = vector.shape_cast %57 : vector<1x8x32xf32> to vector<8x32xf32>
    %cst_21 = arith.constant dense<0.000000e+00> : vector<32xf32>
    %59 = vector.multi_reduction <add>, %58, %cst_21 [0] : vector<8x32xf32> to vector<32xf32>
    %60 = vector.shape_cast %59 : vector<32xf32> to vector<1x32xf32>
    %cst_22 = arith.constant 8.000000e+00 : f32
    %61 = vector.broadcast %cst_22 : f32 to vector<1x32xf32>
    %62 = arith.divf %60, %61 : vector<1x32xf32>
    %c1_23 = arith.constant 1 : index
    %c0_24 = arith.constant 0 : index
    %c0_25 = arith.constant 0 : index
    %63 = vector.load %arg7[%c1_23, %c0_24, %c0_25] : memref<2x8x32xf32, #tpu.memory_space<vmem>>, vector<1x8x32xf32>
    %64 = vector.shape_cast %63 : vector<1x8x32xf32> to vector<8x32xf32>
    %cst_26 = arith.constant dense<0.000000e+00> : vector<32xf32>
    %65 = vector.multi_reduction <add>, %64, %cst_26 [0] : vector<8x32xf32> to vector<32xf32>
    %66 = vector.shape_cast %65 : vector<32xf32> to vector<1x32xf32>
    %cst_27 = arith.constant 8.000000e+00 : f32
    %67 = vector.broadcast %cst_27 : f32 to vector<1x32xf32>
    %68 = arith.divf %66, %67 : vector<1x32xf32>
    %69 = arith.subf %68, %62 : vector<1x32xf32>
    %70 = vector.broadcast %0 : f32 to vector<1x32xf32>
    %71 = arith.mulf %69, %70 : vector<1x32xf32>
    %72 = arith.addf %62, %71 : vector<1x32xf32>
    %73 = vector.broadcast %72 : vector<1x32xf32> to vector<4x32xf32>
    %74 = arith.mulf %2, %73 : vector<4x32xf32>
    %cst_28 = arith.constant dense<0.000000e+00> : vector<4xf32>
    %75 = vector.multi_reduction <add>, %74, %cst_28 [1] : vector<4x32xf32> to vector<4xf32>
    %76 = vector.shape_cast %75 : vector<4xf32> to vector<4x1xf32>
    %c1_29 = arith.constant 1 : index
    %77 = memref.load %arg1[%c1_29] : memref<2xf32, #tpu.memory_space<smem>>
    %cst_30 = arith.constant 1.000000e+00 : f32
    %78 = arith.addf %77, %cst_30 : f32
    %cst_31 = arith.constant 1.000000e+00 : f32
    %79 = arith.divf %cst_31, %78 : f32
    %80 = vector.broadcast %79 : f32 to vector<4x4xf32>
    %81 = arith.mulf %1, %80 : vector<4x4xf32>
    %82 = vector.broadcast %79 : f32 to vector<4x1xf32>
    %83 = arith.mulf %76, %82 : vector<4x1xf32>
    %84 = vector.extract_strided_slice %3 {offsets = [4, 0], sizes = [4, 256], strides = [1, 1]} : vector<8x256xf32> to vector<4x256xf32>
    %85 = vector.extract_strided_slice %81 {offsets = [0, 0], sizes = [4, 1], strides = [1, 1]} : vector<4x4xf32> to vector<4x1xf32>
    %86 = vector.extract_strided_slice %84 {offsets = [0, 0], sizes = [1, 256], strides = [1, 1]} : vector<4x256xf32> to vector<1x256xf32>
    %87 = vector.broadcast %85 : vector<4x1xf32> to vector<4x256xf32>
    %88 = vector.broadcast %86 : vector<1x256xf32> to vector<4x256xf32>
    %89 = arith.mulf %87, %88 : vector<4x256xf32>
    %90 = vector.broadcast %83 : vector<4x1xf32> to vector<4x256xf32>
    %91 = arith.addf %90, %89 : vector<4x256xf32>
    %92 = vector.extract_strided_slice %81 {offsets = [0, 1], sizes = [4, 1], strides = [1, 1]} : vector<4x4xf32> to vector<4x1xf32>
    %93 = vector.extract_strided_slice %84 {offsets = [1, 0], sizes = [1, 256], strides = [1, 1]} : vector<4x256xf32> to vector<1x256xf32>
    %94 = vector.broadcast %92 : vector<4x1xf32> to vector<4x256xf32>
    %95 = vector.broadcast %93 : vector<1x256xf32> to vector<4x256xf32>
    %96 = arith.mulf %94, %95 : vector<4x256xf32>
    %97 = arith.addf %91, %96 : vector<4x256xf32>
    %98 = vector.extract_strided_slice %81 {offsets = [0, 2], sizes = [4, 1], strides = [1, 1]} : vector<4x4xf32> to vector<4x1xf32>
    %99 = vector.extract_strided_slice %84 {offsets = [2, 0], sizes = [1, 256], strides = [1, 1]} : vector<4x256xf32> to vector<1x256xf32>
    %100 = vector.broadcast %98 : vector<4x1xf32> to vector<4x256xf32>
    %101 = vector.broadcast %99 : vector<1x256xf32> to vector<4x256xf32>
    %102 = arith.mulf %100, %101 : vector<4x256xf32>
    %103 = arith.addf %97, %102 : vector<4x256xf32>
    %104 = vector.extract_strided_slice %81 {offsets = [0, 3], sizes = [4, 1], strides = [1, 1]} : vector<4x4xf32> to vector<4x1xf32>
    %105 = vector.extract_strided_slice %84 {offsets = [3, 0], sizes = [1, 256], strides = [1, 1]} : vector<4x256xf32> to vector<1x256xf32>
    %106 = vector.broadcast %104 : vector<4x1xf32> to vector<4x256xf32>
    %107 = vector.broadcast %105 : vector<1x256xf32> to vector<4x256xf32>
    %108 = arith.mulf %106, %107 : vector<4x256xf32>
    %109 = arith.addf %103, %108 : vector<4x256xf32>
    %110 = tpu.concatenate %56, %109 in 0 : vector<4x256xf32>, vector<4x256xf32> -> vector<8x256xf32>
    %c0_32 = arith.constant 0 : index
    %c0_33 = arith.constant 0 : index
    %111 = vector.load %arg8[%c0_32, %c0_33] : memref<8x256xf32, #tpu.memory_space<vmem>>, vector<8x256xf32>
    tpu.vector_store %arg8[%c0_32, %c0_33], %110 {strides = array<i32>} : memref<8x256xf32, #tpu.memory_space<vmem>>, vector<8x256xf32>,
    return
  }
  func.func @transform_0(%arg0: i32) -> i32 {
    %c0_i32 = arith.constant 0 : i32
    %c0_i32_0 = arith.constant 0 : i32
    return %c0_i32 : i32
  }
  func.func @transform_1(%arg0: i32) -> i32 {
    %c0_i32 = arith.constant 0 : i32
    %c0_i32_0 = arith.constant 0 : i32
    return %c0_i32 : i32
  }
  func.func @transform_2(%arg0: i32) -> (i32, i32) {
    %c0_i32 = arith.constant 0 : i32
    %c0_i32_0 = arith.constant 0 : i32
    %c0_i32_1 = arith.constant 0 : i32
    return %c0_i32, %c0_i32_0 : i32, i32
  }
  func.func @transform_3(%arg0: i32) -> (i32, i32) {
    %c0_i32 = arith.constant 0 : i32
    %c0_i32_0 = arith.constant 0 : i32
    %c0_i32_1 = arith.constant 0 : i32
    return %c0_i32, %c0_i32_0 : i32, i32
  }
  func.func @transform_4(%arg0: i32) -> (i32, i32) {
    %c0_i32 = arith.constant 0 : i32
    %c0_i32_0 = arith.constant 0 : i32
    %c0_i32_1 = arith.constant 0 : i32
    return %c0_i32, %c0_i32_0 : i32, i32
  }
  func.func @transform_5(%arg0: i32) -> (i32, i32, i32) {
    %c0_i32 = arith.constant 0 : i32
    %c0_i32_0 = arith.constant 0 : i32
    %c0_i32_1 = arith.constant 0 : i32
    %c0_i32_2 = arith.constant 0 : i32
    return %c0_i32, %c0_i32_0, %c0_i32_1 : i32, i32, i32
  }
  func.func @transform_6(%arg0: i32) -> (i32, i32, i32) {
    %c0_i32 = arith.constant 0 : i32
    %c0_i32_0 = arith.constant 0 : i32
    %c0_i32_1 = arith.constant 0 : i32
    %c0_i32_2 = arith.constant 0 : i32
    return %c0_i32, %c0_i32_0, %c0_i32_1 : i32, i32, i32
  }
  func.func @transform_7(%arg0: i32) -> (i32, i32) {
    %c0_i32 = arith.constant 0 : i32
    %c0_i32_0 = arith.constant 0 : i32
    %c0_i32_1 = arith.constant 0 : i32
    return %c0_i32, %c0_i32_0 : i32, i32
  }
}

</mosaic_0001>

<bundles_post_ra>
// kernel: tpu_custom_call.1
= control target key start
LH: loop header
LB: loop body
LE: loop exit
PB: predicated region body
PF: predicated region fallthrough
CT: control target
= control target key end

     0   :  { %13 = vsyncpa [#allocation6], 0  ;;  %s591_s0 = inlined_call_operand.hbm [shape: f32[2], index: 0, kind: input, shape index: {}]   ;;  %s592_s1 = inlined_call_operand.<no memory space> [shape: f32[1], index: 1, kind: input, shape index: {}]   ;;  %s593_s2 = inlined_call_operand.hbm [shape: f32[8,256], index: 2, kind: input, shape index: {}]   ;;  %s594_s3 = inlined_call_operand.hbm [shape: f32[4,4], index: 3, kind: input, shape index: {}]   ;;  %s595_s4 = inlined_call_operand.vmem [shape: f32[4,32], index: 4, kind: input, shape index: {}]   ;;  %s596_s5 = inlined_call_operand.hbm [shape: f32[2,8,32], index: 5, kind: input, shape index: {}]   ;;  %s597_s6 = inlined_call_operand.hbm [shape: f32[2,8,32], index: 6, kind: input, shape index: {}]   ;;  %s598_s7 = inlined_call_operand.hbm [shape: f32[8,256], index: 7, kind: output, shape index: {}]  }
   0x1   :  { %14 = vsyncpa [#allocation4], 0 }
   0x2   :  { %15 = vsyncpa [#allocation9], 0 }
   0x3   :  { %16 = vsyncpa [#allocation12], 0  ;;  %s45_s26 = sshll.u32 %s594_s3, 4  ;;  %s46_s26 = int_to_ptr.hbm [resolvable:$true] %s45_s26 }
   0x4   :  { %17 = vsyncpa [#allocation5], 0  ;;  %s497_s27 = smov [#allocation8]   ;;  %s23_s8 = sshll.u32 %s591_s0, 4  ;;  %s24_s8 = int_to_ptr.hbm [resolvable:$true] %s23_s8 }
   0x5   :  { %s47_s28 = sshll.u32 %s497_s27, 4  ;;  %s498_s9 = smov [#allocation3]   ;;  %s48_s28 = int_to_ptr.vmem [resolvable:$true] %s47_s28 }
   0x6   :  { %50 = dma.hbm_to_vmem [thread:$0]  %s46_s26, 64, %s48_s28, [#allocation9]  }
   0x7   :  { %26 = dma.hbm_to_smem %s24_s8, 16, %s498_s9, [#allocation6]  }
   0x8   :  { %s34_s12 = sshll.u32 %s593_s2, 4  ;;  %s499_s13 = smov [#allocation7]   ;;  %s35_s12 = int_to_ptr.hbm [resolvable:$true] %s34_s12 }
   0x9   :  { %s36_s3 = sshll.u32 %s499_s13, 4  ;;  %s57_s16 = sshll.u32 %s596_s5, 4  ;;  %s37_s3 = int_to_ptr.vmem [resolvable:$true] %s36_s3  ;;  %s58_s16 = int_to_ptr.hbm [resolvable:$true] %s57_s16 }
   0xa   :  { %39 = dma.hbm_to_vmem [thread:$0]  %s35_s12, 256, %s37_s3, [#allocation4]  }
   0xb   :  { %s500_s17 = smov [#allocation10]   ;;  %s501_s18 = smov 128  }
   0xc   :  { %s59_s0 = sshll.u32 %s500_s17, 4  ;;  %s502_s19 = smov 8   ;;  %s60_s0 = int_to_ptr.vmem [resolvable:$true] %s59_s0 }
   0xd   :  { %65 = dma.hbm_to_vmem [thread:$0]  %s58_s16, 256, %s60_s0, [#allocation9], %s501_s18, %s501_s18, %s502_s19  }
   0xe   :  { %s70_s2 = sshll.u32 %s597_s6, 4  ;;  %s503_s22 = smov [#allocation11]   ;;  %s71_s2 = int_to_ptr.hbm [resolvable:$true] %s70_s2 }
   0xf   :  { %s72_s23 = sshll.u32 %s503_s22, 4  ;;  %s73_s23 = int_to_ptr.vmem [resolvable:$true] %s72_s23 }
  0x10   :  { %78 = dma.hbm_to_vmem [thread:$0]  %s71_s2, 256, %s73_s23, [#allocation12], %s501_s18, %s501_s18, %s502_s19  }
  0x11   :  { %487 = dma.done.wait [#allocation6], 16  }
  0x12   :  { %488 = vsyncadd [#allocation6], 4294967280 }
  0x13   :  { %489 = dma.done.wait [#allocation4], 256  }
  0x14   :  { %490 = vsyncadd [#allocation4], 4294967040 }
  0x15   :  { %491 = dma.done.wait [#allocation9], 320  }
  0x16   :  { %492 = vsyncadd [#allocation9], 4294966976 }
  0x17   :  { %493 = dma.done.wait [#allocation12], 256  }
  0x18   :  { %494 = vsyncadd [#allocation12], 4294967040 }
  0x19   :  { %99 = sfence }
  0x1a   :  { %s140_s5 = sld [smem:[#allocation3]]  ;;  %vm106_vm0 = vcmask 261120   ;;  %v504_v0 = vmov 8.0   ;;  %v203_v1 = vld [vmem:[#allocation10 + $0x8] sm:$0xff]  ;;  %v213_v2 = vld [vmem:[#allocation11 + $0x8] sm:$0xff]  ;;  %v105_v3 = vld [vmem:[#allocation10] sm:$0xff]  ;;  %v132_v34 = vstv %s592_s1 }
  0x1b   :  { %s565_s24 = sld [smem:[#allocation3 + $0x1]]  ;;  %349 = vrcp.f32 %v504_v0  ;;  %v204_v4 = vsel %vm106_vm0, %v203_v1, 0.0  ;;  %v214_v5 = vsel %vm106_vm0, %v213_v2, 0.0  ;;  %v107_v6 = vsel %vm106_vm0, %v105_v3, 0.0  ;;  %v122_v7 = vld [vmem:[#allocation11] sm:$0xff]  ;;  %s509_s30 = smov [#allocation13]  }
  0x1c   :  { %v205_v8 = vrot.slane %v204_v4, 4  ;;  %v215_v9 = vrot.slane %v214_v5, 4  ;;  %v108_v10 = vrot.slane %v107_v6, 4  ;;  %v123_v11 = vsel %vm106_vm0, %v122_v7, 0.0  ;;  %v102_v0 = vld [vmem:[%s595_s4] sm:$0xf] }
  0x1d   :  { %v124_v12 = vrot.slane %v123_v11, 4  ;;  %vm136_vm10 = vcmask 257024   ;;  %vm297_vm11 = vcmask 1043456   ;;  %s307_s8 = sshll.u32 %s509_s30, 4  ;;  %s309_s11 = sshll.u32 %s598_s7, 4  ;;  %s308_s8 = int_to_ptr.vmem [resolvable:$true] %s307_s8  ;;  %s310_s11 = int_to_ptr.hbm [resolvable:$true] %s309_s11 }
  0x1e   :  { %v206_v13 = vadd.f32 %v205_v8, %v204_v4  ;;  %v216_v14 = vadd.f32 %v215_v9, %v214_v5  ;;  %v109_v15 = vadd.f32 %v108_v10, %v107_v6 }
  0x1f   :  { %v125_v16 = vadd.f32 %v124_v12, %v123_v11 }
  0x20   :  { %s141_s6 = sadd.f32 1.0, %s140_s5  ;;  %v207_v18 = vrot.slane %v206_v13, 2  ;;  %v217_v19 = vrot.slane %v216_v14, 2  ;;  %v110_v22 = vrot.slane %v109_v15, 2 }
  0x21   :  { %v350_v17 = vpop.eup %349  ;;  %s230_s25 = sadd.f32 1.0, %s565_s24  ;;  %v126_v23 = vrot.slane %v125_v16, 2 }
  0x22   :  { %v142_v20 = vstv %s141_s6  ;;  %v115_v21 = vmul.f32 8.0, %v350_v17  ;;  %v208_v26 = vadd.f32 %v207_v18, %v206_v13  ;;  %v218_v27 = vadd.f32 %v217_v19, %v216_v14 }
  0x23   :  { %351 = vrcp.f32 %v142_v20  ;;  %v231_v24 = vstv %s230_s25  ;;  %vm119_vm1 = vweird.f32 %v350_v17  ;;  %v111_v31 = vadd.f32 %v110_v22, %v109_v15 }
  0x24   :  { %v116_v25 = vsub.f32 1.0, %v115_v21  ;;  %353 = vrcp.f32 %v231_v24  ;;  %v209_v29 = vrot.slane %v208_v26, 1  ;;  %v219_v30 = vrot.slane %v218_v27, 1 }
  0x25   :  { %v127_v32 = vadd.f32 %v126_v23, %v125_v16  ;;  %vm148_vm2 = vweird.f32 %v142_v20  ;;  %v112_v38 = vrot.slane %v111_v31, 1  ;;  %v152_v41 = vand.u32 2147483647, %v142_v20  ;;  %v101_v16 = vld [vmem:[#allocation8] sm:$0xf] }
  0x26   :  { %v117_v28 = vmul.f32 %v350_v17, %v116_v25  ;;  %v210_v35 = vadd.f32 %v209_v29, %v208_v26  ;;  %v220_v37 = vadd.f32 %v219_v30, %v218_v27  ;;  %v154_v42 = vand.u32 2147483648, %v142_v20  ;;  %v104_v29 = vld [vmem:[#allocation7 + $0x8] sm:$0xff] }
  0x27   :  { %v128_v39 = vrot.slane %v127_v32, 1  ;;  %v113_v47 = vadd.f32 %v112_v38, %v111_v31  ;;  %vm237_vm4 = vweird.f32 %v231_v24  ;;  %v243_v51 = vand.u32 2147483648, %v231_v24 }
  0x28   :  { %v118_v33 = vadd.f32 %v350_v17, %v117_v28  ;;  %v241_v57 = vand.u32 2147483647, %v231_v24  ;;  %v155_v59 = vor.u32 1.1754944e-38, %v154_v42  ;;  %vm153_vm7 = vcmp.eq.f32.partialorder %v152_v41, 8.507059e+37  ;;  %v103_v28 = vld [vmem:[#allocation7] sm:$0xff] }
  0x29   :  { %v352_v36 = vpop.eup %351  ;;  %v129_v48 = vadd.f32 %v128_v39, %v127_v32  ;;  %v244_v1 = vor.u32 1.1754944e-38, %v243_v51  ;;  %v505_v14 = vmov 1   ;;  %v506_v15 = vmov 0  }
  0x2a   :  { %v144_v40 = vmul.f32 %v352_v36, %v142_v20  ;;  %v120_v43 = vsel %vm119_vm1, %v350_v17, %v118_v33  ;;  %v354_v44 = vpop.eup %353  ;;  %vm149_vm3 = vweird.f32 %v352_v36  ;;  %vm242_vm9 = vcmp.eq.f32.partialorder %v241_v57, 8.507059e+37  ;;  %341 = vset.pattern.permute.xlu1 %v505_v14  ;;  %343 = vset.pattern.permute.xlu2 %v506_v15 }
  0x2b   :  { %v211_v45 = vmul.f32 %v210_v35, %v120_v43  ;;  %v221_v46 = vmul.f32 %v220_v37, %v120_v43  ;;  %v233_v50 = vmul.f32 %v354_v44, %v231_v24  ;;  %v121_v53 = vmul.f32 %v120_v43, %v113_v47  ;;  %vm572_vm6 = vmor %vm148_vm2, %vm149_vm3  ;;  %340 = vset.pattern.permute.xlu0 %v506_v15 }
  0x2c   :  { %v145_v49 = vsub.f32 1.0, %v144_v40  ;;  %v130_v54 = vmul.f32 %v129_v48, %v120_v43  ;;  %vm238_vm5 = vweird.f32 %v354_v44  ;;  %v507_v21 = vmov 2  }
  0x2d   :  { %v222_v52 = vsub.f32 %v221_v46, %v211_v45  ;;  %v234_v56 = vsub.f32 1.0, %v233_v50  ;;  %vm239_vm8 = vmor %vm237_vm4, %vm238_vm5  ;;  %v508_v22 = vmov 3   ;;  %v166_v30 = vperm.slane %v103_v28, 0 }
  0x2e   :  { %v146_v55 = vmul.f32 %v352_v36, %v145_v49  ;;  %v131_v61 = vsub.f32 %v130_v54, %v121_v53  ;;  %v167_v31 = vperm.slane %v104_v29, 0  ;;  %v255_v32 = vperm.slane %v103_v28, 4 }
  0x2f   :  { %v223_v60 = vmul.f32 %v222_v52, %v132_v34  ;;  %v235_v63 = vmul.f32 %v354_v44, %v234_v56  ;;  %v256_v33 = vperm.slane %v104_v29, 4  ;;  %v265_v41 = vperm.slane %v103_v28, 5 }
  0x30   :  { %v147_v62 = vadd.f32 %v352_v36, %v146_v55  ;;  %v133_v3 = vmul.f32 %v132_v34, %v131_v61  ;;  %v266_v42 = vperm.slane %v104_v29, 5  ;;  %v186_v46 = vperm.slane %v103_v28, 2 }
  0x31   :  { %v224_v2 = vadd.f32 %v223_v60, %v211_v45  ;;  %v236_v5 = vadd.f32 %v354_v44, %v235_v63  ;;  %v177_v45 = vperm.slane %v104_v29, 1  ;;  %v187_v47 = vperm.slane %v104_v29, 2 }
  0x32   :  { %v151_v4 = vsel %vm572_vm6, %v352_v36, %v147_v62  ;;  %v134_v8 = vadd.f32 %v133_v3, %v121_v53  ;;  %v275_v49 = vperm.slane %v103_v28, 6  ;;  %v276_v50 = vperm.slane %v104_v29, 6 }
  0x33   :  { %v156_v6 = vsel %vm153_vm7, %v155_v59, %v151_v4  ;;  %v225_v7 = vmul.f32 %v224_v2, %v102_v0  ;;  %v240_v9 = vsel %vm239_vm8, %v354_v44, %v236_v5  ;;  %v176_v44 = vperm.slane %v103_v28, 1 }
  0x34   :  { %323 = vpush %v156_v6  ;;  %v245_v10 = vsel %vm242_vm9, %v244_v1, %v240_v9  ;;  %v135_v12 = vmul.f32 %v134_v8, %v102_v0  ;;  %v285_v63 = vperm.slane %v103_v28, 7  ;;  %v286_v0 = vperm.slane %v104_v29, 7 }
  0x35   :  { %v226_v11 = vsel %vm136_vm10, %v225_v7, 0.0  ;;  %325 = vpush %v245_v10  ;;  %v196_v3 = vperm.slane %v103_v28, 3  ;;  %v197_v4 = vperm.slane %v104_v29, 3 }
  0x36   :  { %227 = vadd.xlane.f32.xlu2 %v226_v11  ;;  %v137_v13 = vsel %vm136_vm10, %v135_v12, 0.0 }
  0x37   :  { %138 = vadd.xlane.f32.xlu0 %v137_v13 }
  0x65   :  { %s582_s4 = spop %323 }
  0x66   :  { %v158_v17 = vstv %s582_s4  ;;  %s585_s29 = spop %325 }
  0x67   :  { %v159_v18 = vmul.f32 %v158_v17, %v101_v16  ;;  %v247_v19 = vstv %s585_s29 }
  0x68   :  { %v248_v20 = vmul.f32 %v247_v19, %v101_v16 }
  0x69   :  { %173 = vperm.xlu1 %341, %v159_v18   ;;  %163 = vperm.xlu0 %340, %v159_v18  }
  0x6a   :  { %252 = vperm.xlu2 %343, %v248_v20  }
  0x71   :  { %342 = vset.pattern.permute.xlu1 %v507_v21  ;;  %348 = vset.pattern.permute.xlu0 %v508_v22 }
  0x72   :  { %183 = vperm.xlu1 %342, %v159_v18   ;;  %347 = vset.pattern.permute.xlu2 %v508_v22 }
  0x73   :  { %193 = vperm.xlu2 %347, %v159_v18  }
  0x7a   :  { %344 = vset.pattern.permute.xlu1 %v505_v14 }
  0x7b   :  { %262 = vperm.xlu1 %344, %v248_v20  }
  0x83   :  { %345 = vset.pattern.permute.xlu1 %v507_v21 }
  0x84   :  { %272 = vperm.xlu1 %345, %v248_v20  }
  0x8c   :  { %346 = vset.pattern.permute.xlu1 %v508_v22 }
  0x8d   :  { %282 = vperm.xlu1 %346, %v248_v20  }
  0xa9   :  { %v228_v26 = vpop.xlane.xlu2 %227 }
  0xaa   :  { %v139_v25 = vpop.xlane.xlu0 %138  ;;  %v249_v48 = vmul.f32 %v247_v19, %v228_v26 }
  0xab   :  { %v160_v36 = vmul.f32 %v158_v17, %v139_v25 }
  0xc4   :  { %v253_v35 = vpop.permute.xlu2 %252 }
  0xc5   :  { %v257_v39 = vmul.f32 %v255_v32, %v253_v35  ;;  %v258_v40 = vmul.f32 %v256_v33, %v253_v35 }
  0xc7   :  { %v259_v53 = vadd.f32 %v257_v39, %v249_v48  ;;  %v260_v54 = vadd.f32 %v258_v40, %v249_v48 }
  0xcd   :  { %v194_v7 = vpop.permute.xlu2 %193 }
  0xce   :  { %v198_v15 = vmul.f32 %v196_v3, %v194_v7  ;;  %v199_v16 = vmul.f32 %v197_v4, %v194_v7 }
  0xdb   :  { %v174_v23 = vpop.permute.xlu1 %173  ;;  %v164_v34 = vpop.permute.xlu0 %163 }
  0xdc   :  { %v168_v37 = vmul.f32 %v166_v30, %v164_v34  ;;  %v169_v38 = vmul.f32 %v167_v31, %v164_v34  ;;  %v178_v57 = vmul.f32 %v176_v44, %v174_v23  ;;  %v179_v58 = vmul.f32 %v177_v45, %v174_v23 }
  0xde   :  { %v170_v51 = vadd.f32 %v168_v37, %v160_v36  ;;  %v171_v52 = vadd.f32 %v169_v38, %v160_v36 }
  0xe0   :  { %v180_v1 = vadd.f32 %v178_v57, %v170_v51  ;;  %v181_v2 = vadd.f32 %v179_v58, %v171_v52 }
  0xe4   :  { %v184_v24 = vpop.permute.xlu1 %183 }
  0xe5   :  { %v188_v59 = vmul.f32 %v186_v46, %v184_v24  ;;  %v189_v60 = vmul.f32 %v187_v47, %v184_v24 }
  0xe7   :  { %v190_v8 = vadd.f32 %v188_v59, %v180_v1  ;;  %v191_v9 = vadd.f32 %v189_v60, %v181_v2 }
  0xe9   :  { %v200_v19 = vadd.f32 %v198_v15, %v190_v8  ;;  %v201_v20 = vadd.f32 %v199_v16, %v191_v9 }
  0xed   :  { %v263_v27 = vpop.permute.xlu1 %262 }
  0xee   :  { %v267_v55 = vmul.f32 %v265_v41, %v263_v27  ;;  %v268_v56 = vmul.f32 %v266_v42, %v263_v27 }
  0xf0   :  { %v269_v5 = vadd.f32 %v267_v55, %v259_v53  ;;  %v270_v6 = vadd.f32 %v268_v56, %v260_v54 }
  0xf6   :  { %v273_v43 = vpop.permute.xlu1 %272 }
  0xf7   :  { %v277_v61 = vmul.f32 %v275_v49, %v273_v43  ;;  %v278_v62 = vmul.f32 %v276_v50, %v273_v43 }
  0xf9   :  { %v279_v11 = vadd.f32 %v277_v61, %v269_v5  ;;  %v280_v12 = vadd.f32 %v278_v62, %v270_v6 }
  0xff   :  { %v283_v10 = vpop.permute.xlu1 %282 }
 0x100   :  { %v287_v13 = vmul.f32 %v285_v63, %v283_v10  ;;  %v288_v14 = vmul.f32 %v286_v0, %v283_v10 }
 0x102   :  { %v289_v17 = vadd.f32 %v287_v13, %v279_v11  ;;  %v290_v18 = vadd.f32 %v288_v14, %v280_v12 }
 0x104   :  { %v293_v21 = vrot.slane %v289_v17, 4  ;;  %v294_v22 = vrot.slane %v290_v18, 4 }
 0x106   :  { %v298_v23 = vsel %vm297_vm11, %v200_v19, %v293_v21  ;;  %v299_v24 = vsel %vm297_vm11, %v201_v20, %v294_v22 }
 0x107   :  { %300 = vst [vmem:[#allocation13] sm:$0xff] %v298_v23 }
 0x108   :  { %301 = vst [vmem:[#allocation13 + $0x8] sm:$0xff] %v299_v24 }
 0x109   :  { %312 = dma.vmem_to_hbm [thread:$0]  %s308_s8, 256, %s310_s11, [#allocation5]  }
 0x10a   :  { %495 = dma.done.wait [#allocation5], 256  }
 0x10b   :  { %496 = vsyncadd [#allocation5], 4294967040 }
 0x10c   :  { %317 = vsyncpa [#allocation4], 1 }
 0x10d   :  { %318 = vsyncpa [#allocation9], 1 }
 0x10e   :  { %319 = vsyncpa [#allocation12], 1 }
 0x10f   :  { %320 = vsyncpa [#allocation5], 1 }
 0x110   :  { %321 = vsyncpa [#allocation6], 1 }

</bundles_post_ra>
